<compile_context>
chip_gen: v6e
topology: v6e:2x2x1
jax: 0.10.0
libtpu: 0.0.40
codegen_flags: <defaults>
</compile_context>

<pallas_src>
import jax
import jax.numpy as jnp
from jax.experimental import pallas as pl
from jax.experimental.pallas import tpu as pltpu


def _round_up(x, m):
    return (x + m - 1) // m * m


def conv_bn_relu_kernel(cols_ref, w_ref, shift_ref, out_ref):
    """One lane-tile of the fused conv + BN + ReLU.

    cols_ref : (K_PAD, TM)  im2col patches, contraction dim on sublanes (bf16/f32)
    w_ref    : (CP, K_PAD)  BN-scale-folded conv weight, Cout on sublanes
    shift_ref: (CP, 1)      folded BN shift (beta - mean*scale), f32
    out_ref  : (CP, TM)     output tile, Cout on sublanes / spatial on lanes, f32
    """
    y = jnp.dot(w_ref[...], cols_ref[...], preferred_element_type=jnp.float32)
    y = y + shift_ref[...]                       # lane-broadcast of (CP, 1), f32
    out_ref[...] = jnp.maximum(y, 0.0).astype(out_ref.dtype)


def basic_conv2d_forward(x, conv_w, gamma, beta, running_mean, running_var,
                         *, eps=1e-5, padding=1, compute_dtype=jnp.bfloat16,
                         max_tile=2048):
    """x: (B, Cin, H, W); conv_w: (Cout, Cin, KH, KW); BN params: (Cout,)."""
    B, Cin, H, W = x.shape
    Cout, Cin2, KH, KW = conv_w.shape
    assert Cin2 == Cin
    Hout = H + 2 * padding - KH + 1
    Wout = W + 2 * padding - KW + 1
    K = KH * KW * Cin
    M = Hout * Wout

    K_PAD = _round_up(K, 128)      # lane/sublane-dense contraction depth
    CP = _round_up(Cout, 8)        # Cout on sublanes
    M_PAD = _round_up(M, 128)      # per-batch spatial extent on lanes
    N_TOTAL = B * M_PAD            # batch folded into the lane axis

    # ---- im2col in the wrapper (fuses into the input copy in XLA). ----
    x_pad = jnp.pad(x, ((0, 0), (0, 0), (padding, padding), (padding, padding)))
    taps = []
    for kh in range(KH):
        for kw in range(KW):
            taps.append(x_pad[:, :, kh:kh + Hout, kw:kw + Wout])  # (B,Cin,Hout,Wout)
    cols = jnp.stack(taps, axis=1)                 # (B, KH*KW, Cin, Hout, Wout)
    cols = cols.reshape(B, K, M)
    cols = jnp.pad(cols, ((0, 0), (0, K_PAD - K), (0, M_PAD - M)))
    cols = jnp.transpose(cols, (1, 0, 2)).reshape(K_PAD, N_TOTAL)
    cols = cols.astype(compute_dtype)

    # ---- Fold BatchNorm (eval mode) into the bias-free conv weight, in f32. ----
    inv = (gamma / jnp.sqrt(running_var + eps)).astype(jnp.float32)      # (Cout,)
    shift = (beta - running_mean * inv).astype(jnp.float32)              # (Cout,)
    # (Cout, Cin, KH, KW) -> (KH, KW, Cin, Cout) -> (K, Cout): matches im2col K order.
    w_mat = jnp.transpose(conv_w, (2, 3, 1, 0)).reshape(K, Cout).astype(jnp.float32)
    w_t = w_mat.T * inv[:, None]                                         # (Cout, K)
    w_pad = jnp.zeros((CP, K_PAD), compute_dtype).at[:Cout, :K].set(
        w_t.astype(compute_dtype))
    shift_pad = jnp.zeros((CP, 1), jnp.float32).at[:Cout, 0].set(shift)

    # ---- Pick a lane tile that divides the batch-folded spatial extent. ----
    TM = (min(max_tile, N_TOTAL) // 128) * 128
    while N_TOTAL % TM != 0:
        TM -= 128
    num_tiles = N_TOTAL // TM

    out = pl.pallas_call(
        conv_bn_relu_kernel,
        grid=(num_tiles,),
        out_shape=jax.ShapeDtypeStruct((CP, N_TOTAL), jnp.float32),
        in_specs=[
            pl.BlockSpec((K_PAD, TM), lambda t: (0, t)),   # im2col lane tile
            pl.BlockSpec((CP, K_PAD), lambda t: (0, 0)),   # resident folded weight
            pl.BlockSpec((CP, 1), lambda t: (0, 0)),       # resident folded shift
        ],
        out_specs=pl.BlockSpec((CP, TM), lambda t: (0, t)),
        compiler_params=pltpu.CompilerParams(
            dimension_semantics=("parallel",),
            vmem_limit_bytes=32 * 1024 * 1024),
    )(cols, w_pad, shift_pad)

    # Undo layout plumbing: (CP, B*M_PAD) -> (B, Cout, Hout, Wout).
    out = out.reshape(CP, B, M_PAD)
    out = jnp.transpose(out, (1, 0, 2))[:, :Cout, :M]
    return out.reshape(B, Cout, Hout, Wout)


def basic_conv2d_reference(x, conv_w, gamma, beta, running_mean, running_var,
                           *, eps=1e-5, padding=1):
    """Pure-JAX reference matching the PyTorch forward (eval-mode BN)."""
    y = jax.lax.conv_general_dilated(
        x, conv_w, window_strides=(1, 1),
        padding=((padding, padding), (padding, padding)),
        dimension_numbers=("NCHW", "OIHW", "NCHW"),
        precision=jax.lax.Precision.HIGHEST)
    inv = gamma / jnp.sqrt(running_var + eps)
    y = y * inv[None, :, None, None] + (beta - running_mean * inv)[None, :, None, None]
    return jnp.maximum(y, 0.0)


if __name__ == "__main__":
    B, Cin, H, W = 2, 4, 16, 16
    Cout, KH, KW, P = 8, 3, 3, 1
    eps = 1e-5

    key = jax.random.PRNGKey(0)
    kx, kw_, kg, kb, km, kv = jax.random.split(key, 6)

    x = jax.random.normal(kx, (B, Cin, H, W), jnp.float32)
    bound = 1.0 / (Cin * KH * KW) ** 0.5          # nn.Conv2d default init bound
    conv_w = jax.random.uniform(kw_, (Cout, Cin, KH, KW), jnp.float32, -bound, bound)
    gamma = 1.0 + 0.1 * jax.random.normal(kg, (Cout,), jnp.float32)
    beta = 0.1 * jax.random.normal(kb, (Cout,), jnp.float32)
    running_mean = 0.1 * jax.random.normal(km, (Cout,), jnp.float32)
    running_var = jax.random.uniform(kv, (Cout,), jnp.float32, 0.5, 1.5)

    ref = basic_conv2d_reference(x, conv_w, gamma, beta, running_mean, running_var,
                                 eps=eps, padding=P)

    # f32-operand run: tight check of the im2col / BN-fold / kernel logic.
    out_f32 = basic_conv2d_forward(x, conv_w, gamma, beta, running_mean, running_var,
                                   eps=eps, padding=P, compute_dtype=jnp.float32)
    out_f32 = jax.block_until_ready(out_f32)
    assert out_f32.shape == (B, Cout, H, W), out_f32.shape
    err_f32 = float(jnp.max(jnp.abs(out_f32 - ref)))
    assert jnp.allclose(out_f32, ref, atol=1e-3, rtol=1e-3), err_f32

    # bf16-operand run (recommended perf config): quantization-aware tolerance.
    out_bf16 = basic_conv2d_forward(x, conv_w, gamma, beta, running_mean, running_var,
                                    eps=eps, padding=P, compute_dtype=jnp.bfloat16)
    out_bf16 = jax.block_until_ready(out_bf16)
    assert out_bf16.shape == (B, Cout, H, W), out_bf16.shape
    err_bf16 = float(jnp.max(jnp.abs(out_bf16 - ref)))
    assert jnp.allclose(out_bf16, ref, atol=3e-2, rtol=3e-2), err_bf16

    print("KERNEL_OK")
</pallas_src>

<mosaic_0001>
module attributes {stable_mosaic.version = 11 : i64} {
  func.func @conv_bn_relu_kernel(%arg0: i32, %arg1: memref<128x512xf32, #tpu.memory_space<vmem>>, %arg2: memref<8x128xf32, #tpu.memory_space<vmem>>, %arg3: memref<8x1xf32, #tpu.memory_space<vmem>>, %arg4: memref<8x512xf32, #tpu.memory_space<vmem>>) attributes {dimension_semantics = [#tpu.dimension_semantics<parallel>], iteration_bounds = array<i64: 1>, scalar_prefetch = 0 : i64, scratch_operands = 0 : i64, tpu.core_type = #tpu.core_type<tc>, window_params = [{transform_indices = @transform_0, window_bounds = array<i64: 128, 512>}, {pipeline_mode = #tpu.pipeline_mode<synchronous>, transform_indices = @transform_1, window_bounds = array<i64: 8, 128>}, {pipeline_mode = #tpu.pipeline_mode<synchronous>, transform_indices = @transform_2, window_bounds = array<i64: 8, 1>}, {transform_indices = @transform_3, window_bounds = array<i64: 8, 512>}]} {
    %c0 = arith.constant 0 : index
    %c0_0 = arith.constant 0 : index
    %0 = vector.load %arg2[%c0, %c0_0] : memref<8x128xf32, #tpu.memory_space<vmem>>, vector<8x128xf32>
    %c0_1 = arith.constant 0 : index
    %c0_2 = arith.constant 0 : index
    %1 = vector.load %arg1[%c0_1, %c0_2] : memref<128x512xf32, #tpu.memory_space<vmem>>, vector<128x512xf32>
    %cst = arith.constant dense<0.000000e+00> : vector<8x512xf32>
    %2 = tpu.matmul %0, %1, %cst {dimension_numbers = #tpu.dot_dimension_numbers<[1], [0], [0], [1], [0, 0, 1, 1], [], []>} : vector<8x128xf32>, vector<128x512xf32>, vector<8x512xf32> -> vector<8x512xf32>
    %c0_3 = arith.constant 0 : index
    %c0_4 = arith.constant 0 : index
    %3 = vector.load %arg3[%c0_3, %c0_4] : memref<8x1xf32, #tpu.memory_space<vmem>>, vector<8x1xf32>
    %4 = vector.broadcast %3 : vector<8x1xf32> to vector<8x512xf32>
    %5 = arith.addf %2, %4 : vector<8x512xf32>
    %cst_5 = arith.constant 0.000000e+00 : f32
    %6 = vector.broadcast %cst_5 : f32 to vector<8x512xf32>
    %7 = arith.maximumf %5, %6 : vector<8x512xf32>
    %c0_6 = arith.constant 0 : index
    %c0_7 = arith.constant 0 : index
    %8 = vector.load %arg4[%c0_6, %c0_7] : memref<8x512xf32, #tpu.memory_space<vmem>>, vector<8x512xf32>
    tpu.vector_store %arg4[%c0_6, %c0_7], %7 {strides = array<i32>} : memref<8x512xf32, #tpu.memory_space<vmem>>, vector<8x512xf32>,
    return
  }
  func.func @transform_0(%arg0: i32) -> (i32, i32) {
    %c0_i32 = arith.constant 0 : i32
    %c0_i32_0 = arith.constant 0 : i32
    return %c0_i32, %arg0 : i32, i32
  }
  func.func @transform_1(%arg0: i32) -> (i32, i32) {
    %c0_i32 = arith.constant 0 : i32
    %c0_i32_0 = arith.constant 0 : i32
    %c0_i32_1 = arith.constant 0 : i32
    return %c0_i32, %c0_i32_0 : i32, i32
  }
  func.func @transform_2(%arg0: i32) -> (i32, i32) {
    %c0_i32 = arith.constant 0 : i32
    %c0_i32_0 = arith.constant 0 : i32
    %c0_i32_1 = arith.constant 0 : i32
    return %c0_i32, %c0_i32_0 : i32, i32
  }
  func.func @transform_3(%arg0: i32) -> (i32, i32) {
    %c0_i32 = arith.constant 0 : i32
    %c0_i32_0 = arith.constant 0 : i32
    return %c0_i32, %arg0 : i32, i32
  }
}

</mosaic_0001>

<bundles_post_ra>
// kernel: tpu_custom_call.1
= control target key start
LH: loop header
LB: loop body
LE: loop exit
PB: predicated region body
PF: predicated region fallthrough
CT: control target
= control target key end

     0   :  { %8 = vsyncpa [#allocation3], 0  ;;  %s354_s0 = inlined_call_operand.hbm [shape: f32[128,512], index: 0, kind: input, shape index: {}]   ;;  %s355_s1 = inlined_call_operand.vmem [shape: f32[8,128], index: 1, kind: input, shape index: {}]   ;;  %s356_s2 = inlined_call_operand.vmem [shape: f32[8,1], index: 2, kind: input, shape index: {}]   ;;  %s357_s3 = inlined_call_operand.hbm [shape: f32[8,512], index: 3, kind: output, shape index: {}]  }
   0x1   :  { %9 = vsyncpa [#allocation4], 0  ;;  %s316_s12 = smov [#allocation2]  }
   0x2   :  { %s15_s13 = sshll.u32 %s316_s12, 4  ;;  %s16_s13 = int_to_ptr.vmem [resolvable:$true] %s15_s13 }
   0x3   :  { %s280_s14 = scalar_lea.vmem %s16_s13, 8192  ;;  %p285_p1 = scmp.lt.s32.totalorder %s16_s13, %s16_s13 }
   0x4   :  { %p281_p0 = scmp.ne.s32.totalorder %s16_s13, %s280_s14  ;;  %p286_p2 = scmp.lt.s32.totalorder %s280_s14, %s280_s14 }
   0x6   :  { %p287_p3 = por %p286_p2, %p285_p1 }
   0x8   :  { %p288_p4 = pnand %p287_p3, %p281_p0 }
   0xa   :  { %291 = shalt.err (!%p288_p4)
}
   0xb   :  { %s317_s15 = smov 512   ;;  %s318_s16 = smov 32  }
   0xc   :  { %21 = dma.hbm_to_vmem [thread:$0]  %s354_s0, 8192, %s16_s13, [#allocation3], %s317_s15, %s317_s15, %s318_s16  }
   0xd   :  { %312 = dma.done.wait [#allocation3], 8192  }
   0xe   :  { %313 = vsyncadd [#allocation3], 4294959104  ;;  %v319_v0 = vmov 0.0   ;;  %v320_v1 = vmov 0   ;;  %v91_v2 = vld [vmem:[#allocation2 + $0x1e8] sm:$0xff]  ;;  %v93_v3 = vld [vmem:[#allocation2 + $0x1f8] sm:$0xff] }
   0xf   :  { %164 = vmatprep.mubr.f32.mxu0 %v319_v0  ;;  %235 = vmatprep.mubr.f32.mxu1 %v319_v0  ;;  %v90_v4 = vld [vmem:[#allocation2 + $0x1e0] sm:$0xff]  ;;  %v92_v5 = vld [vmem:[#allocation2 + $0x1f0] sm:$0xff]  ;;  %v87_v6 = vld [vmem:[#allocation2 + $0x1c8] sm:$0xff]  ;;  %s321_s22 = smov [#allocation5]  }
  0x10   :  { %271 = vset.pattern.permute.xlu0 %v320_v1  ;;  %100 = vmatprep.subr.mxu0 %v91_v2  ;;  %v89_v7 = vld [vmem:[#allocation2 + $0x1d8] sm:$0xff]  ;;  %v86_v8 = vld [vmem:[#allocation2 + $0x1c0] sm:$0xff]  ;;  %v88_v9 = vld [vmem:[#allocation2 + $0x1d0] sm:$0xff] }
  0x11   :  { %171 = vmatprep.subr.mxu1 %v93_v3  ;;  %101 = vmatpush1.msra.mxu0 %v90_v4  ;;  %v83_v10 = vld [vmem:[#allocation2 + $0x1a8] sm:$0xff]  ;;  %v85_v11 = vld [vmem:[#allocation2 + $0x1b8] sm:$0xff]  ;;  %v82_v12 = vld [vmem:[#allocation2 + $0x1a0] sm:$0xff] }
  0x12   :  { %172 = vmatpush1.msra.mxu1 %v92_v5  ;;  %102 = vmatprep.subr.mxu0 %v87_v6  ;;  %v84_v13 = vld [vmem:[#allocation2 + $0x1b0] sm:$0xff]  ;;  %v79_v14 = vld [vmem:[#allocation2 + $0x188] sm:$0xff]  ;;  %v81_v15 = vld [vmem:[#allocation2 + $0x198] sm:$0xff] }
  0x13   :  { %173 = vmatprep.subr.mxu1 %v89_v7  ;;  %103 = vmatpush1.msra.mxu0 %v86_v8  ;;  %v78_v16 = vld [vmem:[#allocation2 + $0x180] sm:$0xff]  ;;  %v80_v17 = vld [vmem:[#allocation2 + $0x190] sm:$0xff]  ;;  %v75_v18 = vld [vmem:[#allocation2 + $0x168] sm:$0xff] }
  0x14   :  { %174 = vmatpush1.msra.mxu1 %v88_v9  ;;  %104 = vmatprep.subr.mxu0 %v83_v10  ;;  %v77_v19 = vld [vmem:[#allocation2 + $0x178] sm:$0xff]  ;;  %v74_v20 = vld [vmem:[#allocation2 + $0x160] sm:$0xff]  ;;  %v76_v21 = vld [vmem:[#allocation2 + $0x170] sm:$0xff] }
  0x15   :  { %175 = vmatprep.subr.mxu1 %v85_v11  ;;  %105 = vmatpush1.msra.mxu0 %v82_v12  ;;  %v71_v22 = vld [vmem:[#allocation2 + $0x148] sm:$0xff]  ;;  %v73_v23 = vld [vmem:[#allocation2 + $0x158] sm:$0xff]  ;;  %v70_v24 = vld [vmem:[#allocation2 + $0x140] sm:$0xff] }
  0x16   :  { %176 = vmatpush1.msra.mxu1 %v84_v13  ;;  %106 = vmatprep.subr.mxu0 %v79_v14  ;;  %v72_v25 = vld [vmem:[#allocation2 + $0x150] sm:$0xff]  ;;  %v67_v26 = vld [vmem:[#allocation2 + $0x128] sm:$0xff]  ;;  %v69_v27 = vld [vmem:[#allocation2 + $0x138] sm:$0xff] }
  0x17   :  { %177 = vmatprep.subr.mxu1 %v81_v15  ;;  %107 = vmatpush1.msra.mxu0 %v78_v16  ;;  %v66_v28 = vld [vmem:[#allocation2 + $0x120] sm:$0xff]  ;;  %v68_v29 = vld [vmem:[#allocation2 + $0x130] sm:$0xff]  ;;  %v63_v30 = vld [vmem:[#allocation2 + $0x108] sm:$0xff] }
  0x18   :  { %178 = vmatpush1.msra.mxu1 %v80_v17  ;;  %108 = vmatprep.subr.mxu0 %v75_v18  ;;  %v65_v31 = vld [vmem:[#allocation2 + $0x118] sm:$0xff]  ;;  %v62_v32 = vld [vmem:[#allocation2 + $0x100] sm:$0xff]  ;;  %v64_v33 = vld [vmem:[#allocation2 + $0x110] sm:$0xff] }
  0x19   :  { %179 = vmatprep.subr.mxu1 %v77_v19  ;;  %109 = vmatpush1.msra.mxu0 %v74_v20  ;;  %v59_v34 = vld [vmem:[#allocation2 + $0xe8] sm:$0xff]  ;;  %v61_v35 = vld [vmem:[#allocation2 + $0xf8] sm:$0xff]  ;;  %v58_v36 = vld [vmem:[#allocation2 + $0xe0] sm:$0xff] }
  0x1a   :  { %180 = vmatpush1.msra.mxu1 %v76_v21  ;;  %110 = vmatprep.subr.mxu0 %v71_v22  ;;  %v60_v37 = vld [vmem:[#allocation2 + $0xf0] sm:$0xff]  ;;  %v55_v38 = vld [vmem:[#allocation2 + $0xc8] sm:$0xff]  ;;  %v57_v39 = vld [vmem:[#allocation2 + $0xd8] sm:$0xff] }
  0x1b   :  { %181 = vmatprep.subr.mxu1 %v73_v23  ;;  %111 = vmatpush1.msra.mxu0 %v70_v24  ;;  %v54_v40 = vld [vmem:[#allocation2 + $0xc0] sm:$0xff]  ;;  %v56_v41 = vld [vmem:[#allocation2 + $0xd0] sm:$0xff]  ;;  %v51_v42 = vld [vmem:[#allocation2 + $0xa8] sm:$0xff] }
  0x1c   :  { %182 = vmatpush1.msra.mxu1 %v72_v25  ;;  %112 = vmatprep.subr.mxu0 %v67_v26  ;;  %v53_v43 = vld [vmem:[#allocation2 + $0xb8] sm:$0xff]  ;;  %v50_v44 = vld [vmem:[#allocation2 + $0xa0] sm:$0xff]  ;;  %v52_v45 = vld [vmem:[#allocation2 + $0xb0] sm:$0xff] }
  0x1d   :  { %183 = vmatprep.subr.mxu1 %v69_v27  ;;  %113 = vmatpush1.msra.mxu0 %v66_v28  ;;  %v47_v46 = vld [vmem:[#allocation2 + $0x88] sm:$0xff]  ;;  %v49_v47 = vld [vmem:[#allocation2 + $0x98] sm:$0xff]  ;;  %v46_v48 = vld [vmem:[#allocation2 + $0x80] sm:$0xff] }
  0x1e   :  { %184 = vmatpush1.msra.mxu1 %v68_v29  ;;  %114 = vmatprep.subr.mxu0 %v63_v30  ;;  %v48_v49 = vld [vmem:[#allocation2 + $0x90] sm:$0xff]  ;;  %v43_v50 = vld [vmem:[#allocation2 + $0x68] sm:$0xff]  ;;  %v45_v51 = vld [vmem:[#allocation2 + $0x78] sm:$0xff] }
  0x1f   :  { %185 = vmatprep.subr.mxu1 %v65_v31  ;;  %115 = vmatpush1.msra.mxu0 %v62_v32  ;;  %v42_v52 = vld [vmem:[#allocation2 + $0x60] sm:$0xff]  ;;  %v44_v53 = vld [vmem:[#allocation2 + $0x70] sm:$0xff]  ;;  %v39_v54 = vld [vmem:[#allocation2 + $0x48] sm:$0xff] }
  0x20   :  { %186 = vmatpush1.msra.mxu1 %v64_v33  ;;  %116 = vmatprep.subr.mxu0 %v59_v34  ;;  %v41_v55 = vld [vmem:[#allocation2 + $0x58] sm:$0xff]  ;;  %v38_v56 = vld [vmem:[#allocation2 + $0x40] sm:$0xff]  ;;  %v40_v57 = vld [vmem:[#allocation2 + $0x50] sm:$0xff] }
  0x21   :  { %187 = vmatprep.subr.mxu1 %v61_v35  ;;  %117 = vmatpush1.msra.mxu0 %v58_v36  ;;  %v35_v58 = vld [vmem:[#allocation2 + $0x28] sm:$0xff]  ;;  %v37_v59 = vld [vmem:[#allocation2 + $0x38] sm:$0xff]  ;;  %v34_v60 = vld [vmem:[#allocation2 + $0x20] sm:$0xff] }
  0x22   :  { %188 = vmatpush1.msra.mxu1 %v60_v37  ;;  %118 = vmatprep.subr.mxu0 %v55_v38  ;;  %v36_v61 = vld [vmem:[#allocation2 + $0x30] sm:$0xff]  ;;  %v31_v62 = vld [vmem:[#allocation2 + $0x8] sm:$0xff]  ;;  %v33_v63 = vld [vmem:[#allocation2 + $0x18] sm:$0xff] }
  0x23   :  { %189 = vmatprep.subr.mxu1 %v57_v39  ;;  %119 = vmatpush1.msra.mxu0 %v54_v40  ;;  %v30_v0 = vld [vmem:[#allocation2] sm:$0xff]  ;;  %v32_v1 = vld [vmem:[#allocation2 + $0x10] sm:$0xff] }
  0x24   :  { %190 = vmatpush1.msra.mxu1 %v56_v41  ;;  %120 = vmatprep.subr.mxu0 %v51_v42  ;;  %v29_v2 = vld [vmem:[%s355_s1] sm:$0xff]  ;;  %s256_s1 = sshll.u32 %s321_s22, 4  ;;  %s257_s1 = int_to_ptr.vmem [resolvable:$true] %s256_s1 }
  0x25   :  { %191 = vmatprep.subr.mxu1 %v53_v43  ;;  %121 = vmatpush1.msra.mxu0 %v50_v44  ;;  %v94_v3 = vld [vmem:[%s356_s2] sm:$0xff]  ;;  %s292_s2 = scalar_lea.vmem %s257_s1, 512  ;;  %p297_p6 = scmp.lt.s32.totalorder %s257_s1, %s257_s1 }
  0x26   :  { %192 = vmatpush1.msra.mxu1 %v52_v45  ;;  %122 = vmatprep.subr.mxu0 %v47_v46  ;;  %p293_p5 = scmp.ne.s32.totalorder %s257_s1, %s292_s2  ;;  %p298_p7 = scmp.lt.s32.totalorder %s292_s2, %s292_s2 }
  0x27   :  { %193 = vmatprep.subr.mxu1 %v49_v47  ;;  %123 = vmatpush1.msra.mxu0 %v46_v48 }
  0x28   :  { %194 = vmatpush1.msra.mxu1 %v48_v49  ;;  %124 = vmatprep.subr.mxu0 %v43_v50  ;;  %p299_p8 = por %p298_p7, %p297_p6 }
  0x29   :  { %195 = vmatprep.subr.mxu1 %v45_v51  ;;  %125 = vmatpush1.msra.mxu0 %v42_v52 }
  0x2a   :  { %196 = vmatpush1.msra.mxu1 %v44_v53  ;;  %126 = vmatprep.subr.mxu0 %v39_v54  ;;  %p300_p9 = pnand %p299_p8, %p293_p5 }
  0x2b   :  { %197 = vmatprep.subr.mxu1 %v41_v55  ;;  %127 = vmatpush1.msra.mxu0 %v38_v56 }
  0x2c   :  { %198 = vmatpush1.msra.mxu1 %v40_v57  ;;  %128 = vmatprep.subr.mxu0 %v35_v58 }
  0x2d   :  { %199 = vmatprep.subr.mxu1 %v37_v59  ;;  %129 = vmatpush1.msra.mxu0 %v34_v60 }
  0x2e   :  { %200 = vmatpush1.msra.mxu1 %v36_v61  ;;  %130 = vmatprep.subr.mxu0 %v31_v62 }
  0x2f   :  { %201 = vmatprep.subr.mxu1 %v33_v63  ;;  %131 = vmatpush1.msra.mxu0 %v30_v0 }
  0x30   :  { %202 = vmatpush1.msra.mxu1 %v32_v1  ;;  %165 = vmatmul.mubr.f32.vlgmr.msra.gmra.mxu0 %v29_v2 }
  0x31   :  { %236 = vmatmul.mubr.f32.vlgmr.msra.gmra.mxu1 %v29_v2  ;;  %97 = vperm.xlu0 %271, %v94_v3  }
  0xac   :  { %v98_v4 = vpop.permute.xlu0 %97 }
  0xf0   :  { %v166_v5 = vpop.f32.mrf.mxu0 }
  0xf1   :  { %v237_v6 = vpop.f32.mrf.mxu1  ;;  %v167_v7 = vadd.f32 %v166_v5, %v98_v4 }
  0xf2   :  { %v238_v8 = vadd.f32 %v237_v6, %v98_v4  ;;  %v168_v9 = vpop.f32.mrf.mxu0 }
  0xf3   :  { %v239_v10 = vpop.f32.mrf.mxu1  ;;  %v242_v11 = vmax.f32 %v167_v7, 0.0  ;;  %v169_v13 = vadd.f32 %v168_v9, %v98_v4 }
  0xf4   :  { %v244_v12 = vmax.f32 %v238_v8, 0.0  ;;  %v240_v14 = vadd.f32 %v239_v10, %v98_v4 }
  0xf5   :  { %246 = vst [vmem:[#allocation5] sm:$0xff] %v242_v11  ;;  %v243_v15 = vmax.f32 %v169_v13, 0.0 }
  0xf6   :  { %248 = vst [vmem:[#allocation5 + $0x10] sm:$0xff] %v244_v12  ;;  %v245_v16 = vmax.f32 %v240_v14, 0.0 }
  0xf7   :  { %247 = vst [vmem:[#allocation5 + $0x8] sm:$0xff] %v243_v15 }
  0xf8   :  { %249 = vst [vmem:[#allocation5 + $0x18] sm:$0xff] %v245_v16 }
  0xf9   :  { %303 = shalt.err (!%p300_p9)
}
  0xfa   :  { %259 = dma.vmem_to_hbm [thread:$0]  %s257_s1, 512, %s357_s3, [#allocation4]  }
  0xfb   :  { %314 = dma.done.wait [#allocation4], 512  }
  0xfc   :  { %315 = vsyncadd [#allocation4], 4294966784 }
  0xfd   :  { %263 = vsyncpa [#allocation3], 1 }
  0xfe   :  { %264 = vsyncpa [#allocation4], 1 }

</bundles_post_ra>
